<compile_context>
chip_gen: v7x
topology: tpu7x:2x2x1
jax: 0.10.0
libtpu: 0.0.40
codegen_flags: <defaults>
</compile_context>

<pallas_src>
import jax
import jax.numpy as jnp
import numpy as np
from jax.experimental import pallas as pl
from jax.experimental.pallas import tpu as pltpu

_LANES = 128
_MAX_TILE_COLS = 65536                    # max logical rows handled per grid step
_INPUT_VMEM_BUDGET = 16 * 1024 * 1024     # bytes for the double-buffered input blocks


def _round_up(x, m):
    return ((x + m - 1) // m) * m


def _cdiv(a, b):
    return -(-a // b)


def _pick_tile_cols(r, c, pred_itemsize, true_itemsize):
    """Largest 128-multiple column tile that (a) keeps the 2x double-buffered
    input blocks inside _INPUT_VMEM_BUDGET, (b) is capped at _MAX_TILE_COLS and
    (c) is balanced across grid steps so the masked tail wastes <128 columns."""
    bytes_per_col = 2 * c * (pred_itemsize + true_itemsize)   # 2 pipeline buffers / input
    max_cols = _INPUT_VMEM_BUDGET // bytes_per_col
    max_cols = max(_LANES, (max_cols // _LANES) * _LANES)
    max_cols = min(max_cols, _MAX_TILE_COLS)
    nblocks = _cdiv(r, max_cols)
    return min(max_cols, _round_up(_cdiv(r, nblocks), _LANES))


def _make_masked_ce_kernel(num_rows, tile_cols):
    """Kernel over class-major (C, tile_cols) blocks.

    Accumulates sum of masked cross-entropy and valid-row count.  Rows whose
    (one-hot) target is all-zero contribute 0 to both sums.  NOTE: counting
    valid rows as sum(target) assumes one-hot / prob-sum-1 targets, matching
    the reference torchmetrics CE usage.
    """
    needs_mask = (num_rows % tile_cols) != 0

    def kernel(pred_ref, true_ref, ce_ref, cnt_ref, ce_acc, cnt_acc):
        i = pl.program_id(0)

        @pl.when(i == 0)
        def _init():
            ce_acc[...] = jnp.zeros_like(ce_acc)
            cnt_acc[...] = jnp.zeros_like(cnt_acc)

        logits = pred_ref[...].astype(jnp.float32)   # (C, T)
        target = true_ref[...].astype(jnp.float32)   # (C, T)

        # log-softmax pieces over the class (sublane) axis; the per-column
        # reductions ride the (otherwise idle) XLU, exp/log the EUP.
        m = jnp.max(logits, axis=0, keepdims=True)                  # (1, T)
        z = logits - m
        lse = jnp.log(jnp.sum(jnp.exp(z), axis=0, keepdims=True))   # (1, T)
        t_sum = jnp.sum(target, axis=0, keepdims=True)              # (1, T)
        tz = jnp.sum(target * z, axis=0, keepdims=True)             # (1, T)
        #   -sum_c t*(z - lse)  ==  lse * sum_c t  -  sum_c t*z
        ce_col = lse * t_sum - tz                                   # (1, T)

        if needs_mask:
            # Tail columns of the last (partial) block hold undefined data;
            # mask them out of both accumulators (only traced when needed).
            col = jax.lax.broadcasted_iota(jnp.int32, ce_col.shape, 1) + i * tile_cols
            valid = col < num_rows
            ce_col = jnp.where(valid, ce_col, 0.0)
            t_sum = jnp.where(valid, t_sum, 0.0)

        # Slim (1, tile_cols) accumulators: elementwise VPU adds only.
        ce_acc[...] += ce_col
        cnt_acc[...] += t_sum

        @pl.when(i == pl.num_programs(0) - 1)
        def _finalize():
            zero = jnp.zeros(ce_ref.shape, dtype=jnp.float32)
            ce_ref[...] = zero + jnp.sum(ce_acc[...])
            cnt_ref[...] = zero + jnp.sum(cnt_acc[...])

    return kernel


def masked_cross_entropy(pred, true):
    """pred, true: (..., C) logits and (soft-)one-hot targets.
    All-zero target rows are masked out.  Returns (ce_sum, valid_count) f32."""
    c = pred.shape[-1]
    pred2 = pred.reshape(-1, c)
    # One-hot targets are exact in bf16; halves their transpose + DMA bytes.
    true2 = true.reshape(-1, c).astype(jnp.bfloat16)
    r = pred2.shape[0]

    # Class-major (C, R): classes on sublanes, rows on the 128-lane axis.
    # This transpose is the single remaining extra HBM pass (no jnp.pad).
    pred_t = pred2.T
    true_t = true2.T

    tile_cols = _pick_tile_cols(r, c, pred.dtype.itemsize, 2)
    nblocks = _cdiv(r, tile_cols)

    kernel = _make_masked_ce_kernel(r, tile_cols)
    in_map = lambda i: (0, i)
    out_map = lambda i: (0, 0)

    ce, cnt = pl.pallas_call(
        kernel,
        out_shape=(jax.ShapeDtypeStruct((1, 1), jnp.float32),
                   jax.ShapeDtypeStruct((1, 1), jnp.float32)),
        grid_spec=pltpu.PrefetchScalarGridSpec(
            num_scalar_prefetch=0,
            grid=(nblocks,),
            in_specs=[pl.BlockSpec((c, tile_cols), in_map),
                      pl.BlockSpec((c, tile_cols), in_map)],
            out_specs=[pl.BlockSpec((1, 1), out_map),
                       pl.BlockSpec((1, 1), out_map)],
            scratch_shapes=[pltpu.VMEM((1, tile_cols), jnp.float32),
                            pltpu.VMEM((1, tile_cols), jnp.float32)],
        ),
        compiler_params=pltpu.CompilerParams(
            # Reduction axis with resident accumulators -> keep "arbitrary".
            dimension_semantics=("arbitrary",),
            vmem_limit_bytes=32 * 1024 * 1024),
    )(pred_t, true_t)

    return ce[0, 0], cnt[0, 0]


class PlaceHolder:
    """Minimal stand-in for MiDi's PlaceHolder (X: nodes, E: edges)."""
    def __init__(self, X, E):
        self.X = X
        self.E = E


class TrainNonMolecularMetrics:
    """JAX/Pallas version of TrainNonMolecularMetrics.

    forward() returns None, exactly as in the reference.  The Pallas kernel
    performs the masked-CE metric accumulation corresponding to the (dead)
    train_atom_metrics / train_bond_metrics updates.
    """

    def __init__(self, dataset_infos=None):
        # No learnable parameters in the reference __init__; metric state only.
        self.reset()

    def forward(self, masked_pred, masked_true, log: bool):
        # Atoms (X) and bonds (E) stay as separate kernel launches: fusing them
        # would require padding bond classes (5 -> 8), inflating the dominant
        # bond HBM traffic by ~60% to save one ~us launch.
        a_ce, a_cnt = masked_cross_entropy(masked_pred.X, masked_true.X)
        b_ce, b_cnt = masked_cross_entropy(masked_pred.E, masked_true.E)
        self._atom_state = (self._atom_state[0] + a_ce, self._atom_state[1] + a_cnt)
        self._bond_state = (self._bond_state[0] + b_ce, self._bond_state[1] + b_cnt)
        # TODO(synk): wandb.log of torchmetrics .compute() values is host-side
        # logging with no Pallas equivalent; forward returns None per reference.
        return None

    __call__ = forward

    def compute(self):
        a_ce, a_cnt = self._atom_state
        b_ce, b_cnt = self._bond_state
        return {
            "train/AtomCE": a_ce / jnp.maximum(a_cnt, 1.0),
            "train/BondCE": b_ce / jnp.maximum(b_cnt, 1.0),
        }

    def reset(self):
        z = lambda: (jnp.zeros((), jnp.float32), jnp.zeros((), jnp.float32))
        self._atom_state = z()
        self._bond_state = z()


if __name__ == "__main__":
    key = jax.random.PRNGKey(0)
    bs, n, dx, de = 2, 8, 8, 5
    k1, k2, k3, k4 = jax.random.split(key, 4)

    # second graph has 2 padded (masked) nodes
    node_mask = jnp.arange(n)[None, :] < jnp.array([n, n - 2])[:, None]      # (bs, n)
    edge_mask = node_mask[:, :, None] & node_mask[:, None, :]                # (bs, n, n)

    pred_X = jax.random.normal(k1, (bs, n, dx), jnp.float32)                 # atom logits
    pred_E = jax.random.normal(k2, (bs, n, n, de), jnp.float32)              # bond logits
    true_X = jax.nn.one_hot(jax.random.randint(k3, (bs, n), 0, dx), dx,
                            dtype=jnp.float32) * node_mask[..., None]
    true_E = jax.nn.one_hot(jax.random.randint(k4, (bs, n, n), 0, de), de,
                            dtype=jnp.float32) * edge_mask[..., None]

    metrics = TrainNonMolecularMetrics(dataset_infos=None)
    masked_pred = PlaceHolder(pred_X, pred_E)
    masked_true = PlaceHolder(true_X, true_E)

    out = metrics(masked_pred, masked_true, log=True)
    assert out is None  # forward() returns None, matching the PyTorch module
    jax.block_until_ready([metrics._atom_state, metrics._bond_state])

    # correctness check of the kernel against a plain-JAX reference
    def ref_ce(pred, true):
        c = pred.shape[-1]
        p = pred.reshape(-1, c)
        t = true.reshape(-1, c)
        m = t.sum(-1) > 0
        logp = jax.nn.log_softmax(p, axis=-1)
        ce = -(t * logp).sum(-1)
        return jnp.where(m, ce, 0.0).sum() / jnp.maximum(m.sum(), 1)

    vals = metrics.compute()
    np.testing.assert_allclose(np.array(vals["train/AtomCE"]),
                               np.array(ref_ce(pred_X, true_X)), rtol=1e-5, atol=1e-5)
    np.testing.assert_allclose(np.array(vals["train/BondCE"]),
                               np.array(ref_ce(pred_E, true_E)), rtol=1e-5, atol=1e-5)

    print("KERNEL_OK")
</pallas_src>

<mosaic_0001>
module attributes {stable_mosaic.version = 11 : i64} {
  func.func @kernel(%arg0: i32, %arg1: memref<8x128xf32, #tpu.memory_space<vmem>>, %arg2: memref<8x128xbf16, #tpu.memory_space<vmem>>, %arg3: memref<1x1xf32, #tpu.memory_space<vmem>>, %arg4: memref<1x1xf32, #tpu.memory_space<vmem>>, %arg5: memref<1x128xf32, #tpu.memory_space<vmem>>, %arg6: memref<1x128xf32, #tpu.memory_space<vmem>>) attributes {dimension_semantics = [#tpu.dimension_semantics<arbitrary>], iteration_bounds = array<i64: 1>, scalar_prefetch = 0 : i64, scratch_operands = 2 : i64, tpu.core_type = #tpu.core_type<tc>, window_params = [{transform_indices = @transform_0, window_bounds = array<i64: 8, 128>}, {transform_indices = @transform_1, window_bounds = array<i64: 8, 128>}, {pipeline_mode = #tpu.pipeline_mode<synchronous>, transform_indices = @transform_2, window_bounds = array<i64: 1, 1>}, {pipeline_mode = #tpu.pipeline_mode<synchronous>, transform_indices = @transform_3, window_bounds = array<i64: 1, 1>}]} {
    %c0_i32 = arith.constant 0 : i32
    %0 = arith.cmpi eq, %arg0, %c0_i32 : i32
    %1 = arith.extui %0 : i1 to i32
    %c0_i32_0 = arith.constant 0 : i32
    %2 = arith.cmpi ne, %1, %c0_i32_0 : i32
    scf.if %2 {
      %cst_19 = arith.constant 0.000000e+00 : f32
      %40 = vector.broadcast %cst_19 : f32 to vector<1x128xf32>
      %c0_20 = arith.constant 0 : index
      %c0_21 = arith.constant 0 : index
      %41 = vector.load %arg5[%c0_20, %c0_21] : memref<1x128xf32, #tpu.memory_space<vmem>>, vector<1x128xf32>
      tpu.vector_store %arg5[%c0_20, %c0_21], %40 {strides = array<i32>} : memref<1x128xf32, #tpu.memory_space<vmem>>, vector<1x128xf32>,
      %cst_22 = arith.constant 0.000000e+00 : f32
      %42 = vector.broadcast %cst_22 : f32 to vector<1x128xf32>
      %c0_23 = arith.constant 0 : index
      %c0_24 = arith.constant 0 : index
      %43 = vector.load %arg6[%c0_23, %c0_24] : memref<1x128xf32, #tpu.memory_space<vmem>>, vector<1x128xf32>
      tpu.vector_store %arg6[%c0_23, %c0_24], %42 {strides = array<i32>} : memref<1x128xf32, #tpu.memory_space<vmem>>, vector<1x128xf32>,
    } else {
    }
    %c0 = arith.constant 0 : index
    %c0_1 = arith.constant 0 : index
    %3 = vector.load %arg1[%c0, %c0_1] : memref<8x128xf32, #tpu.memory_space<vmem>>, vector<8x128xf32>
    %c0_2 = arith.constant 0 : index
    %c0_3 = arith.constant 0 : index
    %4 = vector.load %arg2[%c0_2, %c0_3] : memref<8x128xbf16, #tpu.memory_space<vmem>>, vector<8x128xbf16>
    %5 = arith.extf %4 : vector<8x128xbf16> to vector<8x128xf32>
    %cst = arith.constant dense<0xFF800000> : vector<128xf32>
    %6 = vector.multi_reduction <maximumf>, %3, %cst [0] : vector<8x128xf32> to vector<128xf32>
    %7 = vector.shape_cast %6 : vector<128xf32> to vector<1x128xf32>
    %8 = vector.broadcast %7 : vector<1x128xf32> to vector<8x128xf32>
    %9 = arith.subf %3, %8 : vector<8x128xf32>
    %10 = math.exp %9 : vector<8x128xf32>
    %cst_4 = arith.constant dense<0.000000e+00> : vector<128xf32>
    %11 = vector.multi_reduction <add>, %10, %cst_4 [0] : vector<8x128xf32> to vector<128xf32>
    %12 = vector.shape_cast %11 : vector<128xf32> to vector<1x128xf32>
    %13 = math.log %12 : vector<1x128xf32>
    %cst_5 = arith.constant dense<0.000000e+00> : vector<128xf32>
    %14 = vector.multi_reduction <add>, %5, %cst_5 [0] : vector<8x128xf32> to vector<128xf32>
    %15 = vector.shape_cast %14 : vector<128xf32> to vector<1x128xf32>
    %16 = arith.mulf %5, %9 : vector<8x128xf32>
    %cst_6 = arith.constant dense<0.000000e+00> : vector<128xf32>
    %17 = vector.multi_reduction <add>, %16, %cst_6 [0] : vector<8x128xf32> to vector<128xf32>
    %18 = vector.shape_cast %17 : vector<128xf32> to vector<1x128xf32>
    %19 = arith.mulf %13, %15 : vector<1x128xf32>
    %20 = arith.subf %19, %18 : vector<1x128xf32>
    %21 = tpu.iota {dimensions = array<i32: 1>} : vector<1x128xi32>
    %c128_i32 = arith.constant 128 : i32
    %22 = arith.muli %arg0, %c128_i32 : i32
    %23 = vector.broadcast %22 : i32 to vector<1x128xi32>
    %24 = arith.addi %21, %23 : vector<1x128xi32>
    %c16_i32 = arith.constant 16 : i32
    %25 = vector.broadcast %c16_i32 : i32 to vector<1x128xi32>
    %26 = arith.cmpi slt, %24, %25 : vector<1x128xi32>
    %cst_7 = arith.constant 0.000000e+00 : f32
    %27 = vector.broadcast %cst_7 : f32 to vector<1x128xf32>
    %28 = arith.select %26, %20, %27 : vector<1x128xi1>, vector<1x128xf32>
    %cst_8 = arith.constant 0.000000e+00 : f32
    %29 = vector.broadcast %cst_8 : f32 to vector<1x128xf32>
    %30 = arith.select %26, %15, %29 : vector<1x128xi1>, vector<1x128xf32>
    %c0_9 = arith.constant 0 : index
    %c0_10 = arith.constant 0 : index
    %31 = vector.load %arg5[%c0_9, %c0_10] : memref<1x128xf32, #tpu.memory_space<vmem>>, vector<1x128xf32>
    %32 = arith.addf %31, %28 : vector<1x128xf32>
    %c0_11 = arith.constant 0 : index
    %c0_12 = arith.constant 0 : index
    %33 = vector.load %arg5[%c0_11, %c0_12] : memref<1x128xf32, #tpu.memory_space<vmem>>, vector<1x128xf32>
    tpu.vector_store %arg5[%c0_11, %c0_12], %32 {strides = array<i32>} : memref<1x128xf32, #tpu.memory_space<vmem>>, vector<1x128xf32>,
    %c0_13 = arith.constant 0 : index
    %c0_14 = arith.constant 0 : index
    %34 = vector.load %arg6[%c0_13, %c0_14] : memref<1x128xf32, #tpu.memory_space<vmem>>, vector<1x128xf32>
    %35 = arith.addf %34, %30 : vector<1x128xf32>
    %c0_15 = arith.constant 0 : index
    %c0_16 = arith.constant 0 : index
    %36 = vector.load %arg6[%c0_15, %c0_16] : memref<1x128xf32, #tpu.memory_space<vmem>>, vector<1x128xf32>
    tpu.vector_store %arg6[%c0_15, %c0_16], %35 {strides = array<i32>} : memref<1x128xf32, #tpu.memory_space<vmem>>, vector<1x128xf32>,
    %c0_i32_17 = arith.constant 0 : i32
    %37 = arith.cmpi eq, %arg0, %c0_i32_17 : i32
    %38 = arith.extui %37 : i1 to i32
    %c0_i32_18 = arith.constant 0 : i32
    %39 = arith.cmpi ne, %38, %c0_i32_18 : i32
    scf.if %39 {
      %cst_19 = arith.constant 0.000000e+00 : f32
      %40 = vector.broadcast %cst_19 : f32 to vector<1x1xf32>
      %c0_20 = arith.constant 0 : index
      %c0_21 = arith.constant 0 : index
      %41 = vector.load %arg5[%c0_20, %c0_21] : memref<1x128xf32, #tpu.memory_space<vmem>>, vector<1x128xf32>
      %42 = vector.shape_cast %41 : vector<1x128xf32> to vector<1x1x128xf32>
      %cst_22 = arith.constant dense<0.000000e+00> : vector<1xf32>
      %43 = vector.multi_reduction <add>, %42, %cst_22 [1, 2] : vector<1x1x128xf32> to vector<1xf32>
      %44 = vector.shape_cast %43 : vector<1xf32> to vector<1x1x1xf32>
      %45 = vector.extract %44[0, 0, 0] : f32 from vector<1x1x1xf32>
      %46 = vector.broadcast %45 : f32 to vector<1x1xf32>
      %47 = arith.addf %40, %46 : vector<1x1xf32>
      %c0_23 = arith.constant 0 : index
      %c0_24 = arith.constant 0 : index
      %48 = vector.load %arg3[%c0_23, %c0_24] : memref<1x1xf32, #tpu.memory_space<vmem>>, vector<1x1xf32>
      tpu.vector_store %arg3[%c0_23, %c0_24], %47 {strides = array<i32>} : memref<1x1xf32, #tpu.memory_space<vmem>>, vector<1x1xf32>,
      %c0_25 = arith.constant 0 : index
      %c0_26 = arith.constant 0 : index
      %49 = vector.load %arg6[%c0_25, %c0_26] : memref<1x128xf32, #tpu.memory_space<vmem>>, vector<1x128xf32>
      %50 = vector.shape_cast %49 : vector<1x128xf32> to vector<1x1x128xf32>
      %cst_27 = arith.constant dense<0.000000e+00> : vector<1xf32>
      %51 = vector.multi_reduction <add>, %50, %cst_27 [1, 2] : vector<1x1x128xf32> to vector<1xf32>
      %52 = vector.shape_cast %51 : vector<1xf32> to vector<1x1x1xf32>
      %53 = vector.extract %52[0, 0, 0] : f32 from vector<1x1x1xf32>
      %54 = vector.broadcast %53 : f32 to vector<1x1xf32>
      %55 = arith.addf %40, %54 : vector<1x1xf32>
      %c0_28 = arith.constant 0 : index
      %c0_29 = arith.constant 0 : index
      %56 = vector.load %arg4[%c0_28, %c0_29] : memref<1x1xf32, #tpu.memory_space<vmem>>, vector<1x1xf32>
      tpu.vector_store %arg4[%c0_28, %c0_29], %55 {strides = array<i32>} : memref<1x1xf32, #tpu.memory_space<vmem>>, vector<1x1xf32>,
    } else {
    }
    return
  }
  func.func @transform_0(%arg0: i32) -> (i32, i32) {
    %c0_i32 = arith.constant 0 : i32
    %c0_i32_0 = arith.constant 0 : i32
    return %c0_i32, %arg0 : i32, i32
  }
  func.func @transform_1(%arg0: i32) -> (i32, i32) {
    %c0_i32 = arith.constant 0 : i32
    %c0_i32_0 = arith.constant 0 : i32
    return %c0_i32, %arg0 : i32, i32
  }
  func.func @transform_2(%arg0: i32) -> (i32, i32) {
    %c0_i32 = arith.constant 0 : i32
    %c0_i32_0 = arith.constant 0 : i32
    %c0_i32_1 = arith.constant 0 : i32
    return %c0_i32, %c0_i32_0 : i32, i32
  }
  func.func @transform_3(%arg0: i32) -> (i32, i32) {
    %c0_i32 = arith.constant 0 : i32
    %c0_i32_0 = arith.constant 0 : i32
    %c0_i32_1 = arith.constant 0 : i32
    return %c0_i32, %c0_i32_0 : i32, i32
  }
}

</mosaic_0001>

<bundles_post_ra>
// kernel: tpu_custom_call.1
= control target key start
LH: loop header
LB: loop body
LE: loop exit
PB: predicated region body
PF: predicated region fallthrough
CT: control target
= control target key end

     0   :  { %9 = vsyncpa [#allocation5], 0  ;;  %s343_s0 = inlined_call_operand.hbm [shape: f32[8,16], index: 0, kind: input, shape index: {}]   ;;  %s344_s1 = inlined_call_operand.hbm [shape: bf16[8,16], index: 1, kind: input, shape index: {}]   ;;  %s345_s2 = inlined_call_operand.hbm [shape: f32[1,1], index: 2, kind: output, shape index: {0}]   ;;  %s346_s3 = inlined_call_operand.hbm [shape: f32[1,1], index: 3, kind: output, shape index: {1}]  }
   0x1   :  { %10 = vsyncpa [#allocation8], 0 }
   0x2   :  { %11 = vsyncpa [#allocation6], 0 }
   0x3   :  { %12 = vsyncpa [#allocation11], 0  ;;  %s266_s12 = smov [#allocation4]   ;;  %s267_s14 = smov [#allocation7]  }
   0x4   :  { %s19_s13 = sshll.u32 %s266_s12, 4  ;;  %s29_s15 = sshll.u32 %s267_s14, 4  ;;  %s20_s13 = int_to_ptr.vmem [resolvable:$true] %s19_s13  ;;  %s30_s15 = int_to_ptr.vmem [resolvable:$true] %s29_s15 }
   0x5   :  { %s170_s18 = scalar_lea.hbm %s343_s0, 128 }
   0x6   :  { %p171_p0 = scmp.ne.s32.totalorder %s343_s0, %s170_s18  ;;  %p174_p1 = scmp.lt.u32.totalorder %s170_s18, %s343_s0 }
   0x8   :  { %p176_p2 = pnand %p174_p1, %p171_p0 }
   0xa   :  { %179 = shalt.err (!%p176_p2)
}
   0xb   :  { %s180_s23 = scalar_lea.vmem %s20_s13, 128  ;;  %p185_p4 = scmp.lt.s32.totalorder %s20_s13, %s20_s13 }
   0xc   :  { %p181_p3 = scmp.ne.s32.totalorder %s20_s13, %s180_s23  ;;  %p186_p5 = scmp.lt.s32.totalorder %s180_s23, %s180_s23 }
   0xe   :  { %p187_p6 = por %p186_p5, %p185_p4 }
  0x10   :  { %p188_p7 = pnand %p187_p6, %p181_p3 }
  0x12   :  { %191 = shalt.err (!%p188_p7)
}
  0x13   :  { %22 = dma.hbm_to_vmem [thread:$0]  %s343_s0, 128, %s20_s13, [#allocation5]  }
  0x14   :  { %s192_s28 = scalar_lea.hbm %s344_s1, 64 }
  0x15   :  { %p193_p8 = scmp.ne.s32.totalorder %s344_s1, %s192_s28  ;;  %p196_p9 = scmp.lt.u32.totalorder %s192_s28, %s344_s1 }
  0x17   :  { %p198_p10 = pnand %p196_p9, %p193_p8 }
  0x19   :  { %201 = shalt.err (!%p198_p10)
}
  0x1a   :  { %s202_s6 = scalar_lea.vmem %s30_s15, 64  ;;  %p207_p12 = scmp.lt.s32.totalorder %s30_s15, %s30_s15 }
  0x1b   :  { %p203_p11 = scmp.ne.s32.totalorder %s30_s15, %s202_s6  ;;  %p208_p13 = scmp.lt.s32.totalorder %s202_s6, %s202_s6 }
  0x1d   :  { %p209_p0 = por %p208_p13, %p207_p12 }
  0x1f   :  { %p210_p1 = pnand %p209_p0, %p203_p11 }
  0x21   :  { %213 = shalt.err (!%p210_p1)
}
  0x22   :  { %32 = dma.hbm_to_vmem [thread:$0]  %s344_s1, 64, %s30_s15, [#allocation8]  }
  0x23   :  { %258 = dma.done.wait [#allocation5], 128  }
  0x24   :  { %259 = vsyncadd [#allocation5], 4294967168 }
  0x25   :  { %260 = dma.done.wait [#allocation8], 64  }
  0x26   :  { %261 = vsyncadd [#allocation8], 4294967232  ;;  %v268_v0 = vmov 0.0   ;;  %v45_v1 = vld [vmem:[#allocation4] sm:$0xff]  ;;  %v46_v2 = vld [vmem:[#allocation7] sm:$0xf]  ;;  %v80_v9 = vlaneseq }
  0x27   :  { %43 = vst [vmem:[#allocation2] sm:$0x1] %v268_v0  ;;  %44 = vst [vmem:[#allocation3] sm:$0x1] %v268_v0  ;;  %v47_v3 = vunpack.c.l.bf16 %v46_v2  ;;  %v48_v4 = vrot.slane %v45_v1, 4  ;;  %vm98_vm1 = vcmask 1040384  }
  0x28   :  { %v81_v14 = vand.u32 127, %v80_v9  ;;  %s269_s1 = smov [#allocation9]   ;;  %vm111_vm2 = vcmask 0   ;;  %s270_s10 = smov [#allocation10]  }
  0x29   :  { %v49_v5 = vmax.f32 %v45_v1, %v48_v4  ;;  %v65_v6 = vrot.slane %v47_v3, 4  ;;  %s133_s8 = sshll.u32 %s269_s1, 4  ;;  %s143_s11 = sshll.u32 %s270_s10, 4  ;;  %s134_s8 = int_to_ptr.vmem [resolvable:$true] %s133_s8  ;;  %s144_s11 = int_to_ptr.vmem [resolvable:$true] %s143_s11 }
  0x2a   :  { %vm85_vm0 = vcmp.lt.s32.totalorder %v81_v14, 16  ;;  %s214_s12 = scalar_lea.vmem %s134_s8, 16  ;;  %s218_s13 = scalar_lea.vmem %s134_s8, 32 }
  0x2b   :  { %v50_v7 = vrot.slane %v49_v5, 2  ;;  %v66_v8 = vadd.f32 %v65_v6, %v47_v3  ;;  %p215_p2 = scmp.ne.s32.totalorder %s134_s8, %s214_s12  ;;  %p219_p3 = scmp.lt.s32.totalorder %s134_s8, %s134_s8 }
  0x2c   :  { %p220_p4 = scmp.lt.s32.totalorder %s218_s13, %s214_s12 }
  0x2d   :  { %v51_v10 = vmax.f32 %v49_v5, %v50_v7  ;;  %v67_v11 = vrot.slane %v66_v8, 2 }
  0x2e   :  { %v91_v19 = vld [vmem:[#allocation3] sm:$0x1]  ;;  %v88_v41 = vld [vmem:[#allocation2] sm:$0x1]  ;;  %p221_p5 = por %p220_p4, %p219_p3 }
  0x2f   :  { %v52_v12 = vrot.slane %v51_v10, 1  ;;  %v68_v13 = vadd.f32 %v67_v11, %v66_v8 }
  0x30   :  { %p222_p6 = pnand %p221_p5, %p215_p2 }
  0x31   :  { %v53_v15 = vmax.f32 %v51_v10, %v52_v12  ;;  %v69_v16 = vrot.slane %v68_v13, 1 }
  0x33   :  { %v54_v17 = vsub.f32 %v45_v1, %v53_v15  ;;  %v70_v18 = vadd.f32 %v69_v16, %v68_v13 }
  0x35   :  { %v55_v20 = vmul.f32 1.442695, %v54_v17  ;;  %v87_v21 = vsel %vm85_vm0, %v70_v18, 0.0  ;;  %v71_v24 = vmul.f32 %v54_v17, %v47_v3 }
  0x36   :  { %v92_v22 = vadd.f32 %v91_v19, %v87_v21 }
  0x37   :  { %166 = vpow2.f32 %v55_v20  ;;  %v72_v27 = vrot.slane %v71_v24, 4 }
  0x38   :  { %93 = vst [vmem:[#allocation3] sm:$0x1] %v92_v22 }
  0x39   :  { %v73_v30 = vadd.f32 %v72_v27, %v71_v24 }
  0x3b   :  { %v74_v33 = vrot.slane %v73_v30, 2 }
  0x3d   :  { %v75_v34 = vadd.f32 %v74_v33, %v73_v30 }
  0x3f   :  { %v76_v35 = vrot.slane %v75_v34, 1  ;;  %v113_v45 = vld [vmem:[#allocation3] sm:$0x1] }
  0x40   :  { %v114_v47 = vsel %vm98_vm1, %v113_v45, 0.0 }
  0x41   :  { %v167_v23 = vpop.eup %166  ;;  %v77_v38 = vadd.f32 %v76_v35, %v75_v34 }
  0x42   :  { %v57_v25 = vrot.slane %v167_v23, 4 }
  0x44   :  { %v58_v26 = vadd.f32 %v167_v23, %v57_v25 }
  0x46   :  { %v59_v28 = vrot.slane %v58_v26, 2 }
  0x48   :  { %v60_v29 = vadd.f32 %v59_v28, %v58_v26 }
  0x4a   :  { %v61_v31 = vrot.slane %v60_v29, 1 }
  0x4c   :  { %v62_v32 = vadd.f32 %v61_v31, %v60_v29 }
  0x4e   :  { %168 = vlog2.f32 %v62_v32 }
  0x58   :  { %v169_v36 = vpop.eup %168 }
  0x59   :  { %v64_v37 = vmul.f32 0.6931472, %v169_v36 }
  0x5b   :  { %v78_v39 = vmul.f32 %v70_v18, %v64_v37 }
  0x5d   :  { %v79_v40 = vsub.f32 %v78_v39, %v77_v38 }
  0x5f   :  { %v86_v42 = vsel %vm85_vm0, %v79_v40, 0.0 }
  0x60   :  { %v89_v43 = vadd.f32 %v88_v41, %v86_v42 }
  0x62   :  { %90 = vst [vmem:[#allocation2] sm:$0x1] %v89_v43 }
  0x69   :  { %v97_v44 = vld [vmem:[#allocation2] sm:$0x1] }
  0x6a   :  { %v99_v46 = vsel %vm98_vm1, %v97_v44, 0.0 }
  0x6b   :  { %100 = vadd.xlane.f32.xlu0 %v99_v46 }
  0x6f   :  { %115 = vadd.xlane.f32.xlu0 %v114_v47 }
  0xf8   :  { %v101_v48 = vpop.xlane.xlu0 %100 }
  0xf9   :  { %v102_v49 = vrot.slane %v101_v48, 4 }
  0xfb   :  { %v103_v50 = vadd.f32 %v102_v49, %v101_v48 }
  0xfc   :  { %v116_v51 = vpop.xlane.xlu0 %115 }
  0xfd   :  { %v104_v52 = vrot.slane %v103_v50, 2  ;;  %v117_v53 = vrot.slane %v116_v51, 4 }
  0xff   :  { %v118_v54 = vadd.f32 %v117_v53, %v116_v51  ;;  %v105_v55 = vadd.f32 %v104_v52, %v103_v50 }
 0x101   :  { %v119_v56 = vrot.slane %v118_v54, 2  ;;  %v106_v57 = vrot.slane %v105_v55, 1 }
 0x103   :  { %v120_v58 = vadd.f32 %v119_v56, %v118_v54  ;;  %v107_v59 = vadd.f32 %v106_v57, %v105_v55 }
 0x105   :  { %157 = vpush %v107_v59  ;;  %v121_v60 = vrot.slane %v120_v58, 1 }
 0x107   :  { %v122_v61 = vadd.f32 %v121_v60, %v120_v58 }
 0x109   :  { %159 = vpush %v122_v61 }
 0x136   :  { %s158_s9 = spop %157 }
 0x137   :  { %v109_v62 = vstv %s158_s9 }
 0x138   :  { %112 = vst.msk [vmem:[#allocation9] sm:$0x1] %vm111_vm2, %v109_v62 }
 0x139   :  { %225 = shalt.err (!%p222_p6)
}
 0x13a   :  { %s226_s16 = scalar_lea.hbm %s345_s2, 16 }
 0x13b   :  { %p227_p7 = scmp.ne.s32.totalorder %s345_s2, %s226_s16  ;;  %p230_p8 = scmp.lt.u32.totalorder %s226_s16, %s345_s2 }
 0x13d   :  { %p232_p9 = pnand %p230_p8, %p227_p7 }
 0x13f   :  { %235 = shalt.err (!%p232_p9)
}
 0x140   :  { %136 = dma.vmem_to_hbm [thread:$0]  %s134_s8, 16, %s345_s2, [#allocation6]  }
 0x141   :  { %s160_s23 = spop %159  ;;  %s236_s24 = scalar_lea.vmem %s144_s11, 16 }
 0x142   :  { %v124_v63 = vstv %s160_s23  ;;  %p237_p10 = scmp.ne.s32.totalorder %s144_s11, %s236_s24  ;;  %s240_s25 = scalar_lea.vmem %s144_s11, 32 }
 0x143   :  { %126 = vst.msk [vmem:[#allocation10] sm:$0x1] %vm111_vm2, %v124_v63  ;;  %p241_p11 = scmp.lt.s32.totalorder %s144_s11, %s144_s11  ;;  %p242_p12 = scmp.lt.s32.totalorder %s240_s25, %s236_s24 }
 0x145   :  { %p243_p13 = por %p242_p12, %p241_p11 }
 0x147   :  { %p244_p0 = pnand %p243_p13, %p237_p10 }
 0x149   :  { %247 = shalt.err (!%p244_p0)
}
 0x14a   :  { %s248_s28 = scalar_lea.hbm %s346_s3, 16 }
 0x14b   :  { %p249_p1 = scmp.ne.s32.totalorder %s346_s3, %s248_s28  ;;  %p252_p2 = scmp.lt.u32.totalorder %s248_s28, %s346_s3 }
 0x14d   :  { %p254_p3 = pnand %p252_p2, %p249_p1 }
 0x14f   :  { %257 = shalt.err (!%p254_p3)
}
 0x150   :  { %146 = dma.vmem_to_hbm [thread:$0]  %s144_s11, 16, %s346_s3, [#allocation11]  }
 0x151   :  { %262 = dma.done.wait [#allocation6], 16  }
 0x152   :  { %263 = vsyncadd [#allocation6], 4294967280 }
 0x153   :  { %264 = dma.done.wait [#allocation11], 16  }
 0x154   :  { %265 = vsyncadd [#allocation11], 4294967280 }
 0x155   :  { %153 = vsyncpa [#allocation5], 1 }
 0x156   :  { %154 = vsyncpa [#allocation8], 1 }
 0x157   :  { %155 = vsyncpa [#allocation6], 1 }
 0x158   :  { %156 = vsyncpa [#allocation11], 1 }

</bundles_post_ra>
